<compile_context>
chip_gen: v6e
topology: v6e:2x2x1
jax: 0.10.0
libtpu: 0.0.40
codegen_flags: <defaults>
</compile_context>

<pallas_src>
import jax
import jax.numpy as jnp
from jax.experimental import pallas as pl
from jax.experimental.pallas import tpu as pltpu

_LANE = 128


def _discriminator_kernel(w1_ref, b1_ref, w2_ref, b2_ref, x_ref, o_ref):
    # w1_ref: (3, 4) SMEM, b1_ref: (3,) SMEM, w2_ref: (3,) SMEM, b2_ref: (1,) SMEM
    # x_ref:  (4, TB) VMEM   o_ref: (1, TB) VMEM
    x = x_ref[...]                                  # (4, TB) f32

    y = b2_ref[0]                                   # scalar
    for j in range(3):                              # hidden units (fully unrolled)
        h = b1_ref[j]                               # scalar
        for k in range(4):                          # input features
            h = h + w1_ref[j, k] * x[k:k + 1, :]    # (1, TB) after first add
        # sigmoid(h): exp -> EUP, approx reciprocal -> EUP
        h = pl.reciprocal(1.0 + jnp.exp(-h), approx=True)
        y = y + w2_ref[j] * h                       # (1, TB)

    o_ref[...] = pl.reciprocal(1.0 + jnp.exp(-y), approx=True)


def discriminator_forward(x, w1, b1, w2, b2, *, tile_b=2048):
    """x: (B, 4) float32 -> (B, 1) float32, same semantics as Discriminator.forward."""
    B = x.shape[0]

    # Lane-dense layout: batch on the last (lane) axis, padded to a 128 multiple.
    b_lanes = max(_LANE, ((B + _LANE - 1) // _LANE) * _LANE)
    tb = max(_LANE, (tile_b // _LANE) * _LANE)      # tile size, multiple of 128
    tb = min(tb, b_lanes)
    b_pad = ((b_lanes + tb - 1) // tb) * tb
    grid = (b_pad // tb,)

    x_t = x.T                                       # (4, B)
    if b_pad != B:
        x_t = jnp.pad(x_t, ((0, 0), (0, b_pad - B)))

    smem = pl.BlockSpec(memory_space=pltpu.MemorySpace.SMEM)

    out_padded = pl.pallas_call(
        _discriminator_kernel,
        out_shape=jax.ShapeDtypeStruct((1, b_pad), jnp.float32),
        grid_spec=pltpu.PrefetchScalarGridSpec(
            num_scalar_prefetch=0,
            grid=grid,
            in_specs=[
                smem,                                        # w1 (3, 4)
                smem,                                        # b1 (3,)
                smem,                                        # w2 (3,)
                smem,                                        # b2 (1,)
                pl.BlockSpec((4, tb), lambda i: (0, i)),     # x_t tile
            ],
            out_specs=pl.BlockSpec((1, tb), lambda i: (0, i)),
        ),
        compiler_params=pltpu.CompilerParams(
            dimension_semantics=("parallel",),
        ),
    )(w1, b1, w2, b2, x_t)

    # Back to PyTorch (B, 1) convention, dropping lane padding.
    return out_padded[0, :B].reshape(B, 1)


def init_params(key):
    """Deterministic init mimicking PyTorch nn.Linear default U[-1/sqrt(fan_in), 1/sqrt(fan_in)].

    Weights are kept in the native PyTorch (out_features, in_features) layout.
    """
    k1, k2, k3, k4 = jax.random.split(key, 4)
    bound1 = 1.0 / jnp.sqrt(4.0)
    bound2 = 1.0 / jnp.sqrt(3.0)
    w1 = jax.random.uniform(k1, (3, 4), jnp.float32, -bound1, bound1)  # Linear(4,3).weight
    b1 = jax.random.uniform(k2, (3,), jnp.float32, -bound1, bound1)    # Linear(4,3).bias
    w2 = jax.random.uniform(k3, (3,), jnp.float32, -bound2, bound2)    # Linear(3,1).weight (row)
    b2 = jax.random.uniform(k4, (1,), jnp.float32, -bound2, bound2)    # Linear(3,1).bias
    return w1, b1, w2, b2


def _reference(x, w1, b1, w2, b2):
    h = jax.nn.sigmoid(x @ w1.T + b1)               # (B, 3)
    return jax.nn.sigmoid(h @ w2.reshape(3, 1) + b2)  # (B, 1)


# TODO(synk): MSELoss / SGD training step and plot_progress are training-side
# utilities, not part of the forward pass, and are intentionally not ported.

if __name__ == "__main__":
    key = jax.random.PRNGKey(0)
    k_params, k_input = jax.random.split(key)

    w1, b1, w2, b2 = init_params(k_params)

    # Small batch of 4-element pattern inputs (e.g. [1,0,1,0]-like). B=300 with
    # tile_b=128 exercises a multi-step grid plus lane-padding + slice-back.
    B = 300
    x = jax.random.uniform(k_input, (B, 4), jnp.float32)

    out = discriminator_forward(x, w1, b1, w2, b2, tile_b=128)
    out = jax.block_until_ready(out)

    ref = _reference(x, w1, b1, w2, b2)
    assert out.shape == (B, 1)
    # approx-reciprocal sigmoid -> allow a slightly looser tolerance than exact.
    assert jnp.allclose(out, ref, atol=2e-3), "mismatch vs reference"

    print("KERNEL_OK")
</pallas_src>

<mosaic_0001>
module attributes {stable_mosaic.version = 11 : i64} {
  func.func @_discriminator_kernel(%arg0: i32, %arg1: memref<3x4xf32, #tpu.memory_space<smem>>, %arg2: memref<3xf32, #tpu.memory_space<smem>>, %arg3: memref<3xf32, #tpu.memory_space<smem>>, %arg4: memref<1xf32, #tpu.memory_space<smem>>, %arg5: memref<4x128xf32, #tpu.memory_space<vmem>>, %arg6: memref<1x128xf32, #tpu.memory_space<vmem>>) attributes {dimension_semantics = [#tpu.dimension_semantics<parallel>], iteration_bounds = array<i64: 3>, scalar_prefetch = 0 : i64, scratch_operands = 0 : i64, tpu.core_type = #tpu.core_type<tc>, window_params = [{transform_indices = @transform_0, window_bounds = array<i64: 3, 4>}, {transform_indices = @transform_1, window_bounds = array<i64: 3>}, {transform_indices = @transform_2, window_bounds = array<i64: 3>}, {transform_indices = @transform_3, window_bounds = array<i64: 1>}, {transform_indices = @transform_4, window_bounds = array<i64: 4, 128>}, {transform_indices = @transform_5, window_bounds = array<i64: 1, 128>}]} {
    %c0 = arith.constant 0 : index
    %c0_0 = arith.constant 0 : index
    %0 = vector.load %arg5[%c0, %c0_0] : memref<4x128xf32, #tpu.memory_space<vmem>>, vector<4x128xf32>
    %c0_1 = arith.constant 0 : index
    %1 = memref.load %arg4[%c0_1] : memref<1xf32, #tpu.memory_space<smem>>
    %c0_2 = arith.constant 0 : index
    %2 = memref.load %arg2[%c0_2] : memref<3xf32, #tpu.memory_space<smem>>
    %c0_3 = arith.constant 0 : index
    %c0_4 = arith.constant 0 : index
    %3 = memref.load %arg1[%c0_3, %c0_4] : memref<3x4xf32, #tpu.memory_space<smem>>
    %4 = vector.extract_strided_slice %0 {offsets = [0, 0], sizes = [1, 128], strides = [1, 1]} : vector<4x128xf32> to vector<1x128xf32>
    %5 = vector.broadcast %3 : f32 to vector<1x128xf32>
    %6 = arith.mulf %5, %4 : vector<1x128xf32>
    %7 = vector.broadcast %2 : f32 to vector<1x128xf32>
    %8 = arith.addf %7, %6 : vector<1x128xf32>
    %c0_5 = arith.constant 0 : index
    %c1 = arith.constant 1 : index
    %9 = memref.load %arg1[%c0_5, %c1] : memref<3x4xf32, #tpu.memory_space<smem>>
    %10 = vector.extract_strided_slice %0 {offsets = [1, 0], sizes = [1, 128], strides = [1, 1]} : vector<4x128xf32> to vector<1x128xf32>
    %11 = vector.broadcast %9 : f32 to vector<1x128xf32>
    %12 = arith.mulf %11, %10 : vector<1x128xf32>
    %13 = arith.addf %8, %12 : vector<1x128xf32>
    %c0_6 = arith.constant 0 : index
    %c2 = arith.constant 2 : index
    %14 = memref.load %arg1[%c0_6, %c2] : memref<3x4xf32, #tpu.memory_space<smem>>
    %15 = vector.extract_strided_slice %0 {offsets = [2, 0], sizes = [1, 128], strides = [1, 1]} : vector<4x128xf32> to vector<1x128xf32>
    %16 = vector.broadcast %14 : f32 to vector<1x128xf32>
    %17 = arith.mulf %16, %15 : vector<1x128xf32>
    %18 = arith.addf %13, %17 : vector<1x128xf32>
    %c0_7 = arith.constant 0 : index
    %c3 = arith.constant 3 : index
    %19 = memref.load %arg1[%c0_7, %c3] : memref<3x4xf32, #tpu.memory_space<smem>>
    %20 = vector.extract_strided_slice %0 {offsets = [3, 0], sizes = [1, 128], strides = [1, 1]} : vector<4x128xf32> to vector<1x128xf32>
    %21 = vector.broadcast %19 : f32 to vector<1x128xf32>
    %22 = arith.mulf %21, %20 : vector<1x128xf32>
    %23 = arith.addf %18, %22 : vector<1x128xf32>
    %cst = arith.constant 0.000000e+00 : f32
    %24 = vector.broadcast %cst : f32 to vector<1x128xf32>
    %25 = arith.subf %24, %23 : vector<1x128xf32>
    %26 = math.exp %25 : vector<1x128xf32>
    %cst_8 = arith.constant 1.000000e+00 : f32
    %27 = vector.broadcast %cst_8 : f32 to vector<1x128xf32>
    %28 = arith.addf %27, %26 : vector<1x128xf32>
    %29 = tpu.reciprocal %28 {approx = true} : vector<1x128xf32> -> vector<1x128xf32>
    %c0_9 = arith.constant 0 : index
    %30 = memref.load %arg3[%c0_9] : memref<3xf32, #tpu.memory_space<smem>>
    %31 = vector.broadcast %30 : f32 to vector<1x128xf32>
    %32 = arith.mulf %31, %29 : vector<1x128xf32>
    %33 = vector.broadcast %1 : f32 to vector<1x128xf32>
    %34 = arith.addf %33, %32 : vector<1x128xf32>
    %c1_10 = arith.constant 1 : index
    %35 = memref.load %arg2[%c1_10] : memref<3xf32, #tpu.memory_space<smem>>
    %c1_11 = arith.constant 1 : index
    %c0_12 = arith.constant 0 : index
    %36 = memref.load %arg1[%c1_11, %c0_12] : memref<3x4xf32, #tpu.memory_space<smem>>
    %37 = vector.extract_strided_slice %0 {offsets = [0, 0], sizes = [1, 128], strides = [1, 1]} : vector<4x128xf32> to vector<1x128xf32>
    %38 = vector.broadcast %36 : f32 to vector<1x128xf32>
    %39 = arith.mulf %38, %37 : vector<1x128xf32>
    %40 = vector.broadcast %35 : f32 to vector<1x128xf32>
    %41 = arith.addf %40, %39 : vector<1x128xf32>
    %c1_13 = arith.constant 1 : index
    %c1_14 = arith.constant 1 : index
    %42 = memref.load %arg1[%c1_13, %c1_14] : memref<3x4xf32, #tpu.memory_space<smem>>
    %43 = vector.extract_strided_slice %0 {offsets = [1, 0], sizes = [1, 128], strides = [1, 1]} : vector<4x128xf32> to vector<1x128xf32>
    %44 = vector.broadcast %42 : f32 to vector<1x128xf32>
    %45 = arith.mulf %44, %43 : vector<1x128xf32>
    %46 = arith.addf %41, %45 : vector<1x128xf32>
    %c1_15 = arith.constant 1 : index
    %c2_16 = arith.constant 2 : index
    %47 = memref.load %arg1[%c1_15, %c2_16] : memref<3x4xf32, #tpu.memory_space<smem>>
    %48 = vector.extract_strided_slice %0 {offsets = [2, 0], sizes = [1, 128], strides = [1, 1]} : vector<4x128xf32> to vector<1x128xf32>
    %49 = vector.broadcast %47 : f32 to vector<1x128xf32>
    %50 = arith.mulf %49, %48 : vector<1x128xf32>
    %51 = arith.addf %46, %50 : vector<1x128xf32>
    %c1_17 = arith.constant 1 : index
    %c3_18 = arith.constant 3 : index
    %52 = memref.load %arg1[%c1_17, %c3_18] : memref<3x4xf32, #tpu.memory_space<smem>>
    %53 = vector.extract_strided_slice %0 {offsets = [3, 0], sizes = [1, 128], strides = [1, 1]} : vector<4x128xf32> to vector<1x128xf32>
    %54 = vector.broadcast %52 : f32 to vector<1x128xf32>
    %55 = arith.mulf %54, %53 : vector<1x128xf32>
    %56 = arith.addf %51, %55 : vector<1x128xf32>
    %cst_19 = arith.constant 0.000000e+00 : f32
    %57 = vector.broadcast %cst_19 : f32 to vector<1x128xf32>
    %58 = arith.subf %57, %56 : vector<1x128xf32>
    %59 = math.exp %58 : vector<1x128xf32>
    %cst_20 = arith.constant 1.000000e+00 : f32
    %60 = vector.broadcast %cst_20 : f32 to vector<1x128xf32>
    %61 = arith.addf %60, %59 : vector<1x128xf32>
    %62 = tpu.reciprocal %61 {approx = true} : vector<1x128xf32> -> vector<1x128xf32>
    %c1_21 = arith.constant 1 : index
    %63 = memref.load %arg3[%c1_21] : memref<3xf32, #tpu.memory_space<smem>>
    %64 = vector.broadcast %63 : f32 to vector<1x128xf32>
    %65 = arith.mulf %64, %62 : vector<1x128xf32>
    %66 = arith.addf %34, %65 : vector<1x128xf32>
    %c2_22 = arith.constant 2 : index
    %67 = memref.load %arg2[%c2_22] : memref<3xf32, #tpu.memory_space<smem>>
    %c2_23 = arith.constant 2 : index
    %c0_24 = arith.constant 0 : index
    %68 = memref.load %arg1[%c2_23, %c0_24] : memref<3x4xf32, #tpu.memory_space<smem>>
    %69 = vector.extract_strided_slice %0 {offsets = [0, 0], sizes = [1, 128], strides = [1, 1]} : vector<4x128xf32> to vector<1x128xf32>
    %70 = vector.broadcast %68 : f32 to vector<1x128xf32>
    %71 = arith.mulf %70, %69 : vector<1x128xf32>
    %72 = vector.broadcast %67 : f32 to vector<1x128xf32>
    %73 = arith.addf %72, %71 : vector<1x128xf32>
    %c2_25 = arith.constant 2 : index
    %c1_26 = arith.constant 1 : index
    %74 = memref.load %arg1[%c2_25, %c1_26] : memref<3x4xf32, #tpu.memory_space<smem>>
    %75 = vector.extract_strided_slice %0 {offsets = [1, 0], sizes = [1, 128], strides = [1, 1]} : vector<4x128xf32> to vector<1x128xf32>
    %76 = vector.broadcast %74 : f32 to vector<1x128xf32>
    %77 = arith.mulf %76, %75 : vector<1x128xf32>
    %78 = arith.addf %73, %77 : vector<1x128xf32>
    %c2_27 = arith.constant 2 : index
    %c2_28 = arith.constant 2 : index
    %79 = memref.load %arg1[%c2_27, %c2_28] : memref<3x4xf32, #tpu.memory_space<smem>>
    %80 = vector.extract_strided_slice %0 {offsets = [2, 0], sizes = [1, 128], strides = [1, 1]} : vector<4x128xf32> to vector<1x128xf32>
    %81 = vector.broadcast %79 : f32 to vector<1x128xf32>
    %82 = arith.mulf %81, %80 : vector<1x128xf32>
    %83 = arith.addf %78, %82 : vector<1x128xf32>
    %c2_29 = arith.constant 2 : index
    %c3_30 = arith.constant 3 : index
    %84 = memref.load %arg1[%c2_29, %c3_30] : memref<3x4xf32, #tpu.memory_space<smem>>
    %85 = vector.extract_strided_slice %0 {offsets = [3, 0], sizes = [1, 128], strides = [1, 1]} : vector<4x128xf32> to vector<1x128xf32>
    %86 = vector.broadcast %84 : f32 to vector<1x128xf32>
    %87 = arith.mulf %86, %85 : vector<1x128xf32>
    %88 = arith.addf %83, %87 : vector<1x128xf32>
    %cst_31 = arith.constant 0.000000e+00 : f32
    %89 = vector.broadcast %cst_31 : f32 to vector<1x128xf32>
    %90 = arith.subf %89, %88 : vector<1x128xf32>
    %91 = math.exp %90 : vector<1x128xf32>
    %cst_32 = arith.constant 1.000000e+00 : f32
    %92 = vector.broadcast %cst_32 : f32 to vector<1x128xf32>
    %93 = arith.addf %92, %91 : vector<1x128xf32>
    %94 = tpu.reciprocal %93 {approx = true} : vector<1x128xf32> -> vector<1x128xf32>
    %c2_33 = arith.constant 2 : index
    %95 = memref.load %arg3[%c2_33] : memref<3xf32, #tpu.memory_space<smem>>
    %96 = vector.broadcast %95 : f32 to vector<1x128xf32>
    %97 = arith.mulf %96, %94 : vector<1x128xf32>
    %98 = arith.addf %66, %97 : vector<1x128xf32>
    %cst_34 = arith.constant 0.000000e+00 : f32
    %99 = vector.broadcast %cst_34 : f32 to vector<1x128xf32>
    %100 = arith.subf %99, %98 : vector<1x128xf32>
    %101 = math.exp %100 : vector<1x128xf32>
    %cst_35 = arith.constant 1.000000e+00 : f32
    %102 = vector.broadcast %cst_35 : f32 to vector<1x128xf32>
    %103 = arith.addf %102, %101 : vector<1x128xf32>
    %104 = tpu.reciprocal %103 {approx = true} : vector<1x128xf32> -> vector<1x128xf32>
    %c0_36 = arith.constant 0 : index
    %c0_37 = arith.constant 0 : index
    %105 = vector.load %arg6[%c0_36, %c0_37] : memref<1x128xf32, #tpu.memory_space<vmem>>, vector<1x128xf32>
    tpu.vector_store %arg6[%c0_36, %c0_37], %104 {strides = array<i32>} : memref<1x128xf32, #tpu.memory_space<vmem>>, vector<1x128xf32>,
    return
  }
  func.func @transform_0(%arg0: i32) -> (i32, i32) {
    %c0_i32 = arith.constant 0 : i32
    %c0_i32_0 = arith.constant 0 : i32
    %c0_i32_1 = arith.constant 0 : i32
    return %c0_i32, %c0_i32_0 : i32, i32
  }
  func.func @transform_1(%arg0: i32) -> i32 {
    %c0_i32 = arith.constant 0 : i32
    %c0_i32_0 = arith.constant 0 : i32
    return %c0_i32 : i32
  }
  func.func @transform_2(%arg0: i32) -> i32 {
    %c0_i32 = arith.constant 0 : i32
    %c0_i32_0 = arith.constant 0 : i32
    return %c0_i32 : i32
  }
  func.func @transform_3(%arg0: i32) -> i32 {
    %c0_i32 = arith.constant 0 : i32
    %c0_i32_0 = arith.constant 0 : i32
    return %c0_i32 : i32
  }
  func.func @transform_4(%arg0: i32) -> (i32, i32) {
    %c0_i32 = arith.constant 0 : i32
    %c0_i32_0 = arith.constant 0 : i32
    return %c0_i32, %arg0 : i32, i32
  }
  func.func @transform_5(%arg0: i32) -> (i32, i32) {
    %c0_i32 = arith.constant 0 : i32
    %c0_i32_0 = arith.constant 0 : i32
    return %c0_i32, %arg0 : i32, i32
  }
}

</mosaic_0001>

<bundles_post_ra>
// kernel: tpu_custom_call.1
= control target key start
LH: loop header
LB: loop body
LE: loop exit
PB: predicated region body
PF: predicated region fallthrough
CT: control target
= control target key end

     0   :  { %s997_s0 = inlined_call_operand.hbm [shape: f32[3,4], index: 0, kind: input, shape index: {}]   ;;  %s998_s1 = inlined_call_operand.vmem [shape: f32[3], index: 1, kind: input, shape index: {}]   ;;  %s999_s2 = inlined_call_operand.vmem [shape: f32[3], index: 2, kind: input, shape index: {}]   ;;  %s1000_s3 = inlined_call_operand.<no memory space> [shape: f32[1], index: 3, kind: input, shape index: {}]   ;;  %s1001_s4 = inlined_call_operand.hbm [shape: f32[4,384], index: 4, kind: input, shape index: {}]   ;;  %s1002_s5 = inlined_call_operand.hbm [shape: f32[1,384], index: 5, kind: output, shape index: {}]  }
   0x1   :  { %10 = sst [smem:[#allocation2]] %s1000_s3 }
   0x2   :  { %11 = vsyncpa [#allocation6], 0 }
   0x3   :  { %12 = vsyncpa [#allocation7], 0 }
   0x4   :  { %13 = vsyncpa [#allocation10], 0 }
   0x5   :  { %14 = vsyncpa [#allocation4], 0 }
   0x6   :  { %16 = vsyncpa [#allocation4 + $0x1], 0 }
   0x7   :  { %17 = vsyncpa [#allocation5], 0 }
   0x8   :  { %19 = vsyncpa [#allocation5 + $0x1], 0  ;;  %s817_s20 = smov 0   ;;  %s819_s21 = smov 0  }
   0x9   :  { %s821_s22 = smov 0   ;;  %s823_s23 = smov 0  }
   0xa LB: > { %s838_s3 = sadd.s32 4294967295, %s777_s23   ;;  %s508_s24 = sadd.s32 4294967294, %s777_s23   ;;  %s777_s23 = sphi %s823_s23, %s1027_s23   ;;  %s773_s22 = sphi %s821_s22, %s1026_s22   ;;  %s769_s21 = sphi %s819_s21, %s1025_s21   ;;  %s765_s20 = sphi %s817_s20, %s1024_s20  }
   0xb   : > { %p129_p0 = scmp.ne.s32.totalorder %s769_s21, %s765_s20  ;;  %p1003_p1 = scmp.eq.s32.totalorder %s838_s3, 0 }
   0xc   : > { %p159_p3 = scmp.eq.s32.totalorder %s508_s24, 2  ;;  %p509_p5 = scmp.ge.s32.totalorder %s777_s23, 1 }
   0xd   : > { %p847_p4 = por %p1003_p1, %p129_p0  ;;  %p166_p7 = scmp.lt.s32.totalorder %s777_s23, 4 }
   0xe   : > { %p852_p6 = por %p159_p3, %p129_p0  ;;  %s188_s30 = sshll.u32 %s998_s1, 4  ;;  %s189_s30 = int_to_ptr.vmem [resolvable:$true] %s188_s30 }
   0xf   : > { %s1007_s25 = scalar_select %p847_p4, 1, 0 }
  0x10   : > { %s1008_s26 = scalar_select %p852_p6, 1, 0 }
  0x11   : > { %p857_p8 = pnand %p509_p5, %p166_p7  ;;  %s199_s8 = sshll.u32 %s999_s2, 4  ;;  %s200_s8 = int_to_ptr.vmem [resolvable:$true] %s199_s8 }
  0x12   : > { %s876_s10 = sadd.s32 1, %s777_s23   ;;  %s779_s11 = smov [#allocation3]  }
  0x13   : > { %s1009_s27 = scalar_select %p857_p8, 1, 0 }
  0x14   : > { %p555_p9 = pneg %p857_p8  ;;  %s643_s14 = scalar_lea.vmem %s189_s30, 16 }
  0x15   : > { %p644_p11 = scmp.ne.s32.totalorder %s189_s30, %s643_s14  ;;  %p651_p3 = scmp.lt.s32.totalorder %s189_s30, %s189_s30 }
  0x16   : > { %p871_p10 = pnand %p555_p9, %p1003_p1  ;;  %p652_p5 = scmp.lt.s32.totalorder %s643_s14, %s643_s14 }
  0x18   : > { %558 = dma.hbm_to_smem (!%p871_p10), %s997_s0, 64, %s779_s11, [#allocation6]  }
  0x19   : > { %p645_p12 = pneg %p871_p10  ;;  %p653_p7 = por %p652_p5, %p651_p3 }
  0x1b   : > { %p646_p13 = pnand %p645_p12, %p644_p11 }
  0x1d   : > { %p647_p0 = pneg %p646_p13 }
  0x1f   : > { %p654_p9 = pnand %p653_p7, %p647_p0 }
  0x21   : > { %657 = shalt.err (!%p654_p9)
}
  0x22   : > { %s780_s15 = smov [#allocation8]   ;;  %s658_s16 = scalar_lea.vmem %s200_s8, 16 }
  0x23   : > { %561 = dma.vmem_to_smem (!%p871_p10), %s189_s30, 16, %s780_s15, [#allocation7]  }
  0x24   : > { %p659_p1 = scmp.ne.s32.totalorder %s200_s8, %s658_s16  ;;  %p666_p4 = scmp.lt.s32.totalorder %s200_s8, %s200_s8 }
  0x25   : > { %p667_p8 = scmp.lt.s32.totalorder %s658_s16, %s658_s16 }
  0x26   : > { %p661_p2 = pnand %p659_p1, %p645_p12 }
  0x27   : > { %p668_p11 = por %p667_p8, %p666_p4 }
  0x28   : > { %p662_p6 = pneg %p661_p2 }
  0x2a   : > { %p669_p13 = pnand %p668_p11, %p662_p6 }
  0x2c   : > { %672 = shalt.err (!%p669_p13)
}
  0x2d   : > { %s781_s17 = smov [#allocation9]   ;;  %s113_s18 = ssub.s32 %s777_s23, %s876_s10 }
  0x2e   : > { %564 = dma.vmem_to_smem (!%p871_p10), %s200_s8, 16, %s781_s17, [#allocation10]  }
  0x2f   : > { %s116_s19 = sadd.s32 1, %s773_s22  ;;  %p114_p1 = scmp.eq.s32.totalorder %s113_s18, 0 }
  0x30   : > { %p123_p2 = scmp.ne.s32.totalorder %s773_s22, %s769_s21  ;;  %p124_p4 = scmp.eq.s32.totalorder %s777_s23, 0 }
  0x31   : > { %p576_p6 = scmp.lt.s32.totalorder %s777_s23, 3  ;;  %p1011_p12 = scmp.eq.s32.totalorder %s838_s3, 2 }
  0x32   : > { %s897_s24 = scalar_select %p114_p1, %s773_s22, %s116_s19  }
  0x33   : > { %p125_p8 = por %p124_p4, %p123_p2  ;;  %p901_p0 = por %p1011_p12, %p123_p2 }
  0x34   : > { %s213_s29 = sand.u32 1, %s773_s22   ;;  %s515_s30 = sshll.u32 %s777_s23, 6 }
  0x35   : > { %s1012_s28 = scalar_select %p901_p0, 1, 0 }
  0x36   : > { %s514_s6 = sshll.u32 %s213_s29, 2  ;;  %s910_s8 = scalar_lea.hbm %s1001_s4, %s515_s30 }
  0x37   : > { %s217_s11 = scalar_lea.vmem [#allocation11], %s514_s6  ;;  %p912_p10 = pnand %p576_p6, %p125_p8 }
  0x38   : > { %s224_s12 = sshll.u32 %s217_s11, 4  ;;  %s214_s14 = scalar_lea.sflag [#allocation4], %s213_s29  ;;  %s225_s12 = int_to_ptr.vmem [resolvable:$true] %s224_s12 }
  0x39   : > { %s673_s15 = scalar_lea.hbm %s910_s8, 64  ;;  %p675_p5 = pneg %p912_p10 }
  0x3a   : > { %p674_p3 = scmp.ne.s32.totalorder %s910_s8, %s673_s15  ;;  %s678_s18 = scalar_lea.hbm %s1001_s4, 192 }
  0x3b   : > { %p679_p11 = scmp.lt.s32.totalorder %s910_s8, %s1001_s4  ;;  %p680_p13 = scmp.lt.s32.totalorder %s678_s18, %s673_s15 }
  0x3c   : > { %p676_p7 = pnand %p675_p5, %p674_p3 }
  0x3d   : > { %p681_p1 = por %p680_p13, %p679_p11 }
  0x3e   : > { %p677_p9 = pneg %p676_p7 }
  0x40   : > { %p682_p2 = pnand %p681_p1, %p677_p9 }
  0x42   : > { %685 = shalt.err (!%p682_p2)
}
  0x43   : > { %s686_s6 = scalar_lea.vmem %s225_s12, 64  ;;  %s782_s29 = smov [#allocation11]  }
  0x44   : > { %p687_p4 = scmp.ne.s32.totalorder %s225_s12, %s686_s6  ;;  %s691_s7 = sshll.u32 %s782_s29, 4  ;;  %s692_s7 = int_to_ptr.vmem [resolvable:$false] %s691_s7 }
  0x45   : > { %s693_s9 = scalar_lea.vmem %s692_s7, 128  ;;  %p694_p12 = scmp.lt.s32.totalorder %s225_s12, %s692_s7 }
  0x46   : > { %p689_p6 = pnand %p687_p4, %p675_p5  ;;  %p695_p3 = scmp.lt.s32.totalorder %s693_s9, %s686_s6 }
  0x48   : > { %p690_p8 = pneg %p689_p6  ;;  %p696_p7 = por %p695_p3, %p694_p12 }
  0x4a   : > { %p697_p0 = pnand %p696_p7, %p690_p8 }
  0x4c   : > { %700 = shalt.err (!%p697_p0)
}
  0x4d   : > { %568 = dma.hbm_to_vmem [thread:$0]  (!%p912_p10), %s910_s8, 64, %s225_s12, %s214_s14  }
  0x4e   : > { %p1014_p9 = scmp.ne.s32.totalorder %s1009_s27, 0 }
  0x4f   : > { %p1015_p11 = scmp.eq.s32.totalorder (!%p1014_p9), %s838_s3, 0 }
  0x50   : > { %233 = sbr.rel (%p1014_p9) target bundleno = 213 (0xd5), region = 40 }
  0x55   : > { %744 = dma.done.wait (%p1015_p11), [#allocation6], 64   ;;  %p1016_p5 = pmov %p1015_p11 }
  0x57   : > { %746 = vsyncadd (%p1016_p5), [#allocation6], 4294967232  ;;  %p1017_p13 = pmov %p1016_p5 }
  0x58   : > { %p1018_p1 = pmov %p1016_p5 }
  0x59   : > { %748 = dma.done.wait (%p1017_p13), [#allocation7], 16  }
  0x5a   : > { %750 = vsyncadd (%p1018_p1), [#allocation7], 4294967280  ;;  %p1019_p0 = pmov %p1018_p1 }
  0x5c   : > { %752 = dma.done.wait (%p1019_p0), [#allocation10], 16   ;;  %p1020_p10 = pmov %p1019_p0 }
  0x5d   : > { %s945_s27 = sand.u32 1, %s769_s21   ;;  %p1021_p2 = scmp.ne.s32.totalorder %s1007_s25, 0 }
  0x5e   : > { %754 = vsyncadd (%p1020_p10), [#allocation10], 4294967280  ;;  %s520_s8 = sshll.u32 %s945_s27, 2  ;;  %s248_s11 = scalar_lea.sflag [#allocation4], %s945_s27 }
  0x5f   : > { %s251_s12 = scalar_lea.vmem [#allocation11], %s520_s8 }
  0x60   : > { %756 = dma.done.wait (%p1021_p2), %s248_s11, 64  }
  0x61   : > { %758 = vsyncadd (%p1021_p2), %s248_s11, 4294967232 }
  0x62   : > { %256 = sfence }
  0x63   : > { %s280_s13 = sld [smem:[#allocation8]]  ;;  %v278_v0 = vld [vmem:[%s251_s12] sm:$0xf]  ;;  %p1022_p6 = scmp.ne.s32.totalorder %s1012_s28, 0 }
  0x64   : > { %s281_s14 = sld [smem:[#allocation3]] }
  0x65   : > { %s521_s15 = sld [smem:[#allocation3 + $0x1]] }
  0x66   : > { %s522_s16 = sld [smem:[#allocation3 + $0x2]] }
  0x67   : > { %s523_s17 = sld [smem:[#allocation3 + $0x3]] }
  0x68   : > { %s524_s18 = sld [smem:[#allocation8 + $0x1]] }
  0x69   : > { %v284_v2 = vstv %s280_s13  ;;  %s525_s19 = sld [smem:[#allocation3 + $0x80]] }
  0x6a   : > { %v282_v1 = vstv %s281_s14  ;;  %s526_s30 = sld [smem:[#allocation3 + $0x81]] }
  0x6b   : > { %v283_v3 = vmul.f32 %v282_v1, %v278_v0  ;;  %v287_v4 = vstv %s521_s15  ;;  %s527_s6 = sld [smem:[#allocation3 + $0x82]] }
  0x6c   : > { %v288_v5 = vmul.f32 %v287_v4, %v278_v0  ;;  %v294_v6 = vstv %s522_s16  ;;  %s528_s25 = sld [smem:[#allocation3 + $0x83]]  ;;  %s277_s16 = scalar_lea.vmem [#allocation12], %s945_s27 }
  0x6d   : > { %v285_v7 = vadd.f32 %v284_v2, %v283_v3  ;;  %v295_v8 = vmul.f32 %v294_v6, %v278_v0  ;;  %v301_v9 = vstv %s523_s17  ;;  %s953_s29 = sld [smem:[#allocation8 + $0x2]]  ;;  %s408_s17 = sshll.u32 %s277_s16, 4  ;;  %s958_s17 = int_to_ptr.vmem [resolvable:$true] %s408_s17 }
  0x6e   : > { %v290_v10 = vrot.slane %v288_v5, 1  ;;  %v302_v11 = vmul.f32 %v301_v9, %v278_v0  ;;  %v321_v16 = vstv %s524_s18  ;;  %s531_s7 = sld [smem:[#allocation3 + $0x100]]  ;;  %s536_s18 = sshll.u32 %s838_s3, 4 }
  0x6f   : > { %v297_v12 = vrot.slane %v295_v8, 2  ;;  %v319_v15 = vstv %s525_s19  ;;  %s532_s9 = sld [smem:[#allocation3 + $0x101]] }
  0x70   : > { %v292_v13 = vadd.f32 %v290_v10, %v285_v7  ;;  %v304_v14 = vrot.slane %v302_v11, 3  ;;  %v320_v17 = vmul.f32 %v319_v15, %v278_v0  ;;  %v324_v18 = vstv %s526_s30  ;;  %s533_s8 = sld [smem:[#allocation3 + $0x102]] }
  0x71   : > { %v325_v20 = vmul.f32 %v324_v18, %v278_v0  ;;  %v331_v21 = vstv %s527_s6  ;;  %s534_s11 = sld [smem:[#allocation3 + $0x103]]  ;;  %s406_s6 = scalar_lea.hbm %s1002_s5, %s536_s18 }
  0x72   : > { %v299_v19 = vadd.f32 %v297_v12, %v292_v13  ;;  %v322_v22 = vadd.f32 %v321_v16, %v320_v17  ;;  %v332_v23 = vmul.f32 %v331_v21, %v278_v0  ;;  %v338_v24 = vstv %s528_s25  ;;  %s312_s12 = sld [smem:[#allocation9]]  ;;  %s396_s25 = scalar_lea.sflag [#allocation5], %s945_s27 }
  0x73   : > { %v327_v26 = vrot.slane %v325_v20, 1  ;;  %v339_v27 = vmul.f32 %v338_v24, %v278_v0  ;;  %v357_v29 = vstv %s953_s29  ;;  %s279_s13 = sld [smem:[#allocation2]]  ;;  %s701_s29 = scalar_lea.vmem %s958_s17, 16 }
  0x74   : > { %v306_v25 = vadd.f32 %v304_v14, %v299_v19  ;;  %v334_v28 = vrot.slane %v332_v23, 2  ;;  %v355_v33 = vstv %s531_s7  ;;  %s529_s14 = sld [smem:[#allocation9 + $0x1]]  ;;  %p702_p4 = scmp.ne.s32.totalorder %s958_s17, %s701_s29 }
  0x75   : > { %v329_v31 = vadd.f32 %v327_v26, %v322_v22  ;;  %v341_v32 = vrot.slane %v339_v27, 3  ;;  %v356_v34 = vmul.f32 %v355_v33, %v278_v0  ;;  %v360_v35 = vstv %s532_s9  ;;  %s535_s15 = sld [smem:[#allocation9 + $0x2]]  ;;  %s783_s7 = smov [#allocation12]  }
  0x76   : > { %v307_v30 = vsub.f32 0.0, %v306_v25  ;;  %v361_v38 = vmul.f32 %v360_v35, %v278_v0  ;;  %v367_v39 = vstv %s533_s8  ;;  %p703_p8 = pnand %p702_p4, %p1022_p6  ;;  %s705_s9 = sshll.u32 %s783_s7, 4  ;;  %s706_s9 = int_to_ptr.vmem [resolvable:$false] %s705_s9 }
  0x77   : > { %v336_v37 = vadd.f32 %v334_v28, %v329_v31  ;;  %v358_v40 = vadd.f32 %v357_v29, %v356_v34  ;;  %v368_v41 = vmul.f32 %v367_v39, %v278_v0  ;;  %v374_v42 = vstv %s534_s11  ;;  %s707_s3 = scalar_lea.vmem %s706_s9, 32  ;;  %p708_p3 = scmp.lt.s32.totalorder %s958_s17, %s706_s9 }
  0x78   : > { %v308_v36 = vmul.f32 1.442695, %v307_v30  ;;  %v363_v44 = vrot.slane %v361_v38, 1  ;;  %v375_v45 = vmul.f32 %v374_v42, %v278_v0  ;;  %v313_v62 = vstv %s312_s12  ;;  %p704_p12 = pneg %p703_p8  ;;  %p709_p7 = scmp.lt.s32.totalorder %s707_s3, %s701_s29 }
  0x79   : > { %v343_v43 = vadd.f32 %v341_v32, %v336_v37  ;;  %v370_v46 = vrot.slane %v368_v41, 2  ;;  %v315_v0 = vstv %s279_s13 }
  0x7a   : > { %616 = vpow2.f32 %v308_v36  ;;  %v365_v48 = vadd.f32 %v363_v44, %v358_v40  ;;  %v377_v49 = vrot.slane %v375_v45, 3  ;;  %v350_v1 = vstv %s529_s14  ;;  %p710_p9 = por %p709_p7, %p708_p3 }
  0x7b   : > { %v344_v47 = vsub.f32 0.0, %v343_v43  ;;  %v386_v5 = vstv %s535_s15 }
  0x7c   : > { %v372_v51 = vadd.f32 %v370_v46, %v365_v48  ;;  %p711_p11 = pnand %p710_p9, %p704_p12 }
  0x7d   : > { %v345_v50 = vmul.f32 1.442695, %v344_v47 }
  0x7e   : > { %v379_v52 = vadd.f32 %v377_v49, %v372_v51 }
  0x7f   : > { %618 = vpow2.f32 %v345_v50 }
  0x80   : > { %v380_v53 = vsub.f32 0.0, %v379_v52 }
  0x82   : > { %v381_v54 = vmul.f32 1.442695, %v380_v53 }
  0x84   : > { %620 = vpow2.f32 %v381_v54 }
  0x87   : > { %v617_v55 = vpop.eup %616 }
  0x88   : > { %v310_v56 = vadd.f32 1.0, %v617_v55 }
  0x8a   : > { %622 = vrcp.f32 %v310_v56 }
  0x8c   : > { %v619_v57 = vpop.eup %618 }
  0x8d   : > { %v347_v58 = vadd.f32 1.0, %v619_v57 }
  0x8f   : > { %624 = vrcp.f32 %v347_v58 }
  0x91   : > { %v621_v59 = vpop.eup %620 }
  0x92   : > { %v383_v60 = vadd.f32 1.0, %v621_v59 }
  0x94   : > { %626 = vrcp.f32 %v383_v60 }
  0x97   : > { %v623_v61 = vpop.eup %622 }
  0x98   : > { %v314_v63 = vmul.f32 %v623_v61, %v313_v62 }
  0x9a   : > { %v316_v3 = vadd.f32 %v315_v0, %v314_v63 }
  0x9c   : > { %v625_v2 = vpop.eup %624 }
  0x9d   : > { %v351_v4 = vmul.f32 %v625_v2, %v350_v1 }
  0x9f   : > { %v352_v6 = vadd.f32 %v351_v4, %v316_v3 }
  0xa1   : > { %v627_v7 = vpop.eup %626 }
  0xa2   : > { %v387_v8 = vmul.f32 %v627_v7, %v386_v5 }
  0xa4   : > { %v388_v9 = vadd.f32 %v387_v8, %v352_v6 }
  0xa6   : > { %v389_v10 = vsub.f32 0.0, %v388_v9 }
  0xa8   : > { %v390_v11 = vmul.f32 1.442695, %v389_v10 }
  0xaa   : > { %628 = vpow2.f32 %v390_v11 }
  0xb7   : > { %v629_v12 = vpop.eup %628 }
  0xb8   : > { %v392_v13 = vadd.f32 1.0, %v629_v12 }
  0xba   : > { %630 = vrcp.f32 %v392_v13 }
  0xc7   : > { %v631_v14 = vpop.eup %630 }
  0xc8   : > { %394 = vst [vmem:[%s277_s16] sm:$0x1] %v631_v14 }
  0xc9   : > { %714 = shalt.err (!%p711_p11)
}
  0xca   : > { %s715_s8 = scalar_lea.hbm %s406_s6, 16  ;;  %s719_s12 = scalar_lea.hbm %s1002_s5, 48 }
  0xcb   : > { %p716_p5 = scmp.ne.s32.totalorder %s406_s6, %s715_s8  ;;  %p720_p0 = scmp.lt.s32.totalorder %s406_s6, %s1002_s5 }
  0xcc   : > { %p721_p10 = scmp.lt.s32.totalorder %s719_s12, %s715_s8 }
  0xcd   : > { %p717_p13 = pnand %p716_p5, %p1022_p6 }
  0xce   : > { %p722_p2 = por %p721_p10, %p720_p0 }
  0xcf   : > { %p718_p1 = pneg %p717_p13 }
  0xd1   : > { %p723_p4 = pnand %p722_p2, %p718_p1 }
  0xd3   : > { %726 = shalt.err (!%p723_p4)
}
  0xd4   : > { %553 = dma.vmem_to_hbm [thread:$0]  (%p1022_p6), %s958_s17, 16, %s406_s6, %s396_s25  }
  0xd5 PF: > { %p580_p8 = scmp.ge.s32.totalorder %s777_s23, 2  ;;  %s420_s15 = sand.u32 1, %s765_s20  }
  0xd6   : > { %p1023_p12 = scmp.ne.s32.totalorder %s1008_s26, 0  ;;  %s421_s16 = scalar_lea.sflag [#allocation5], %s420_s15 }
  0xd8   : > { %p570_p3 = pnand %p580_p8, %p1023_p12 }
  0xda   : > { %p571_p7 = pneg %p570_p3 }
  0xdc   : > { %760 = dma.done.wait (%p571_p7), %s421_s16, 16  }
  0xdd   : > { %762 = vsyncadd (%p571_p7), %s421_s16, 4294967280  ;;  %p22_p9 = scmp.ge.s32.totalorder %s876_s10, 5   ;;  %s1024_s20 = smov %s769_s21 }
  0xde   : > { %s1025_s21 = smov %s773_s22  ;;  %s1026_s22 = smov %s897_s24 }
  0xdf   : > { %s1027_s23 = smov %s876_s10  ;;  %24 = sbr.rel (!%p22_p9) target bundleno = 10 (0xa), region = 99 }
  0xe4   :  { %425 = vsyncpa [#allocation4], 1 }
  0xe5   :  { %427 = vsyncpa [#allocation4 + $0x1], 1 }
  0xe6   :  { %428 = vsyncpa [#allocation5], 1 }
  0xe7   :  { %430 = vsyncpa [#allocation5 + $0x1], 1 }
  0xe8   :  { %431 = vsyncpa [#allocation6], 1 }
  0xe9   :  { %433 = vsyncpa [#allocation6 + $0x1], 1 }
  0xea   :  { %434 = vsyncpa [#allocation7], 1 }
  0xeb   :  { %436 = vsyncpa [#allocation7 + $0x1], 1 }
  0xec   :  { %437 = vsyncpa [#allocation10], 1 }

</bundles_post_ra>
